<compile_context>
chip_gen: v7x
topology: tpu7x:2x2x1
jax: 0.10.0
libtpu: 0.0.40
codegen_flags: <defaults>
</compile_context>

<pallas_src>
import math

import jax
import jax.numpy as jnp
from jax.experimental import pallas as pl
from jax.experimental.pallas import tpu as pltpu

_LANES = 128
_MAX_TILE_ROWS = 2048            # 8 f32 streams x 2 bufs x 2048 x 128 x 4B ~= 16 MiB
_MIN_PALLAS_ELEMENTS = 1 << 17   # below this, XLA's fused elementwise wins


def _reparam_kernel(mu1_ref, lv1_ref, eps1_ref,        # VMEM tiles (tile_rows, 128)
                    mu2_ref, lv2_ref, eps2_ref,
                    s1_ref, s2_ref):                    # VMEM output tiles
    """Fused re-parameterization for both (mu, log_var, eps) triples."""
    # Compute in f32 regardless of storage dtype (avoids bf16 VPU/EUP work on v5e).
    mu1 = mu1_ref[...].astype(jnp.float32)
    lv1 = lv1_ref[...].astype(jnp.float32)
    e1 = eps1_ref[...].astype(jnp.float32)
    s1_ref[...] = (mu1 + jnp.exp(lv1 * 0.5) * e1).astype(s1_ref.dtype)

    mu2 = mu2_ref[...].astype(jnp.float32)
    lv2 = lv2_ref[...].astype(jnp.float32)
    e2 = eps2_ref[...].astype(jnp.float32)
    s2_ref[...] = (mu2 + jnp.exp(lv2 * 0.5) * e2).astype(s2_ref.dtype)


def _sublane_tile(dtype):
    """Native sublane tile for the dtype: 8 (f32), 16 (bf16), 32 (int8/fp8)."""
    itemsize = jnp.dtype(dtype).itemsize
    return max(8, 32 // max(itemsize, 1))


def _tile_rows(rows, dtype):
    """Row-tile size for a (rows, 128) lane-dense array."""
    sub = _sublane_tile(dtype)
    if rows <= sub:
        # Single block equal to the full array extent (explicitly allowed
        # even when smaller than the native sublane tile).
        return rows
    # Aim for >= 2 grid steps so the "parallel" axis splits across both v7x
    # TensorCores; round up to the dtype's sublane tile and cap for VMEM.
    half = pl.cdiv(rows, 2)
    t = pl.cdiv(half, sub) * sub
    return min(_MAX_TILE_ROWS, t)


def _lane_dense(x, rows):
    """Flatten to (rows, 128).  Metadata-only when the size is 128-aligned."""
    flat = x.reshape(-1)
    pad = rows * _LANES - flat.shape[0]
    if pad:
        flat = jnp.pad(flat, (0, pad))
    return flat.reshape(rows, _LANES)


def explorer_vae_umap_forward(means, log_vars,
                              complementary_means, complementary_log_vars,
                              *, training=True, rng_key=None, use_pallas=None):
    """JAX/Pallas equivalent of ExplorerVAE_UMAP.forward."""
    if not training:
        # eval mode: identity on `means`; no kernel launch needed.
        return {"encoded_points": means}

    assert rng_key is not None, "rng_key required in training mode"
    assert (means.shape == log_vars.shape == complementary_means.shape
            == complementary_log_vars.shape), "all four inputs must share one shape"

    shape = means.shape
    dtype = means.dtype
    n = math.prod(shape)

    # eps drawn outside the kernel (same role as torch.randn_like).
    # TODO(synk): in-kernel hardware PRNG (pltpu.prng_seed/stateful_normal) would
    # cut HBM traffic from 8 to 6 streams but has no interpret/CPU lowering.
    k1, k2 = jax.random.split(rng_key)
    eps1 = jax.random.normal(k1, shape, dtype=dtype)
    eps2 = jax.random.normal(k2, shape, dtype=dtype)

    if use_pallas is None:
        use_pallas = n >= _MIN_PALLAS_ELEMENTS
    if not use_pallas:
        # Tiny workload: kernel launch + DMA descriptors dominate; let XLA fuse it.
        return {
            "encoded_points": means + jnp.exp(log_vars / 2) * eps1,
            "encoded_complementary_points":
                complementary_means + jnp.exp(complementary_log_vars / 2) * eps2,
        }

    rows = pl.cdiv(n, _LANES)
    tile_rows = _tile_rows(rows, dtype)
    grid = (pl.cdiv(rows, tile_rows),)

    tile_spec = pl.BlockSpec((tile_rows, _LANES), lambda i: (i, 0))

    s1, s2 = pl.pallas_call(
        _reparam_kernel,
        out_shape=(jax.ShapeDtypeStruct((rows, _LANES), dtype),
                   jax.ShapeDtypeStruct((rows, _LANES), dtype)),
        grid=grid,
        in_specs=[tile_spec] * 6,
        out_specs=(tile_spec, tile_spec),
        compiler_params=pltpu.CompilerParams(
            dimension_semantics=("parallel",),
            vmem_limit_bytes=48 * 1024 * 1024),
    )(_lane_dense(means, rows), _lane_dense(log_vars, rows), _lane_dense(eps1, rows),
      _lane_dense(complementary_means, rows), _lane_dense(complementary_log_vars, rows),
      _lane_dense(eps2, rows))

    if rows * _LANES == n:
        sample1 = s1.reshape(shape)
        sample2 = s2.reshape(shape)
    else:
        sample1 = s1.reshape(-1)[:n].reshape(shape)
        sample2 = s2.reshape(-1)[:n].reshape(shape)
    return {"encoded_points": sample1, "encoded_complementary_points": sample2}


def _reference(means, log_vars, comp_means, comp_log_vars, rng_key):
    """Pure-XLA reference with the same eps streams as the kernel path."""
    k1, k2 = jax.random.split(rng_key)
    eps1 = jax.random.normal(k1, means.shape, dtype=means.dtype)
    eps2 = jax.random.normal(k2, means.shape, dtype=means.dtype)
    return (means + jnp.exp(log_vars / 2) * eps1,
            comp_means + jnp.exp(comp_log_vars / 2) * eps2)


if __name__ == "__main__":
    batch, latent = 8, 32

    key = jax.random.PRNGKey(0)
    k_mu1, k_lv1, k_mu2, k_lv2, k_eps = jax.random.split(key, 5)

    means = jax.random.normal(k_mu1, (batch, latent), dtype=jnp.float32)
    log_vars = 0.1 * jax.random.normal(k_lv1, (batch, latent), dtype=jnp.float32)
    comp_means = jax.random.normal(k_mu2, (batch, latent), dtype=jnp.float32)
    comp_log_vars = 0.1 * jax.random.normal(k_lv2, (batch, latent), dtype=jnp.float32)

    # Training-mode forward through the Pallas kernel (forced on despite the tiny
    # demo size so the kernel path is exercised; production uses the auto threshold).
    out = explorer_vae_umap_forward(
        means, log_vars, comp_means, comp_log_vars,
        training=True, rng_key=k_eps, use_pallas=True)
    jax.block_until_ready(out)

    s1 = out["encoded_points"]
    s2 = out["encoded_complementary_points"]
    assert s1.shape == means.shape and s2.shape == comp_means.shape
    assert bool(jnp.all(jnp.isfinite(s1))) and bool(jnp.all(jnp.isfinite(s2)))

    # Exact-semantics check against the pure-XLA reference (same eps streams).
    r1, r2 = _reference(means, log_vars, comp_means, comp_log_vars, k_eps)
    assert jnp.allclose(s1, r1, rtol=1e-5, atol=1e-5)
    assert jnp.allclose(s2, r2, rtol=1e-5, atol=1e-5)

    # Deterministic for a fixed rng_key.
    out_again = explorer_vae_umap_forward(
        means, log_vars, comp_means, comp_log_vars,
        training=True, rng_key=k_eps, use_pallas=True)
    assert jnp.array_equal(out_again["encoded_points"], s1)
    assert jnp.array_equal(out_again["encoded_complementary_points"], s2)

    # Larger 128-aligned shape -> no pad copies, multi-step "parallel" grid.
    big_shape = (64, 512)
    kb1, kb2, kb3, kb4, kbe = jax.random.split(jax.random.PRNGKey(2), 5)
    bm = jax.random.normal(kb1, big_shape)
    blv = 0.1 * jax.random.normal(kb2, big_shape)
    bcm = jax.random.normal(kb3, big_shape)
    bclv = 0.1 * jax.random.normal(kb4, big_shape)
    out_big = explorer_vae_umap_forward(bm, blv, bcm, bclv,
                                        training=True, rng_key=kbe, use_pallas=True)
    jax.block_until_ready(out_big)
    rb1, rb2 = _reference(bm, blv, bcm, bclv, kbe)
    assert jnp.allclose(out_big["encoded_points"], rb1, rtol=1e-5, atol=1e-5)
    assert jnp.allclose(out_big["encoded_complementary_points"], rb2, rtol=1e-5, atol=1e-5)

    # Padding/slicing path for a shape not aligned to 128 lanes.
    odd_shape = (7, 33)
    km1, kl1, km2, kl2, ke = jax.random.split(jax.random.PRNGKey(1), 5)
    om = jax.random.normal(km1, odd_shape)
    olv = jax.random.normal(kl1, odd_shape)
    ocm = jax.random.normal(km2, odd_shape)
    oclv = jax.random.normal(kl2, odd_shape)
    out_odd = explorer_vae_umap_forward(om, olv, ocm, oclv,
                                        training=True, rng_key=ke, use_pallas=True)
    jax.block_until_ready(out_odd)
    ro1, ro2 = _reference(om, olv, ocm, oclv, ke)
    assert out_odd["encoded_points"].shape == odd_shape
    assert jnp.allclose(out_odd["encoded_points"], ro1, rtol=1e-5, atol=1e-5)
    assert jnp.allclose(out_odd["encoded_complementary_points"], ro2, rtol=1e-5, atol=1e-5)

    # Eval mode: identity on `means`, no kernel launch.
    out_eval = explorer_vae_umap_forward(
        means, log_vars, comp_means, comp_log_vars, training=False)
    jax.block_until_ready(out_eval)
    assert jnp.array_equal(out_eval["encoded_points"], means)

    print("KERNEL_OK")
</pallas_src>

<mosaic_0001>
module attributes {stable_mosaic.version = 11 : i64} {
  func.func @_reparam_kernel(%arg0: i32, %arg1: memref<2x128xf32, #tpu.memory_space<vmem>>, %arg2: memref<2x128xf32, #tpu.memory_space<vmem>>, %arg3: memref<2x128xf32, #tpu.memory_space<vmem>>, %arg4: memref<2x128xf32, #tpu.memory_space<vmem>>, %arg5: memref<2x128xf32, #tpu.memory_space<vmem>>, %arg6: memref<2x128xf32, #tpu.memory_space<vmem>>, %arg7: memref<2x128xf32, #tpu.memory_space<vmem>>, %arg8: memref<2x128xf32, #tpu.memory_space<vmem>>) attributes {dimension_semantics = [#tpu.dimension_semantics<parallel>], iteration_bounds = array<i64: 1>, scalar_prefetch = 0 : i64, scratch_operands = 0 : i64, tpu.core_type = #tpu.core_type<tc>, window_params = [{transform_indices = @transform_0, window_bounds = array<i64: 2, 128>}, {transform_indices = @transform_1, window_bounds = array<i64: 2, 128>}, {transform_indices = @transform_2, window_bounds = array<i64: 2, 128>}, {transform_indices = @transform_3, window_bounds = array<i64: 2, 128>}, {transform_indices = @transform_4, window_bounds = array<i64: 2, 128>}, {transform_indices = @transform_5, window_bounds = array<i64: 2, 128>}, {transform_indices = @transform_6, window_bounds = array<i64: 2, 128>}, {transform_indices = @transform_7, window_bounds = array<i64: 2, 128>}]} {
    %c0 = arith.constant 0 : index
    %c0_0 = arith.constant 0 : index
    %0 = vector.load %arg1[%c0, %c0_0] : memref<2x128xf32, #tpu.memory_space<vmem>>, vector<2x128xf32>
    %c0_1 = arith.constant 0 : index
    %c0_2 = arith.constant 0 : index
    %1 = vector.load %arg2[%c0_1, %c0_2] : memref<2x128xf32, #tpu.memory_space<vmem>>, vector<2x128xf32>
    %c0_3 = arith.constant 0 : index
    %c0_4 = arith.constant 0 : index
    %2 = vector.load %arg3[%c0_3, %c0_4] : memref<2x128xf32, #tpu.memory_space<vmem>>, vector<2x128xf32>
    %cst = arith.constant 5.000000e-01 : f32
    %3 = vector.broadcast %cst : f32 to vector<2x128xf32>
    %4 = arith.mulf %1, %3 : vector<2x128xf32>
    %5 = math.exp %4 : vector<2x128xf32>
    %6 = arith.mulf %5, %2 : vector<2x128xf32>
    %7 = arith.addf %0, %6 : vector<2x128xf32>
    %c0_5 = arith.constant 0 : index
    %c0_6 = arith.constant 0 : index
    %8 = vector.load %arg7[%c0_5, %c0_6] : memref<2x128xf32, #tpu.memory_space<vmem>>, vector<2x128xf32>
    tpu.vector_store %arg7[%c0_5, %c0_6], %7 {strides = array<i32>} : memref<2x128xf32, #tpu.memory_space<vmem>>, vector<2x128xf32>,
    %c0_7 = arith.constant 0 : index
    %c0_8 = arith.constant 0 : index
    %9 = vector.load %arg4[%c0_7, %c0_8] : memref<2x128xf32, #tpu.memory_space<vmem>>, vector<2x128xf32>
    %c0_9 = arith.constant 0 : index
    %c0_10 = arith.constant 0 : index
    %10 = vector.load %arg5[%c0_9, %c0_10] : memref<2x128xf32, #tpu.memory_space<vmem>>, vector<2x128xf32>
    %c0_11 = arith.constant 0 : index
    %c0_12 = arith.constant 0 : index
    %11 = vector.load %arg6[%c0_11, %c0_12] : memref<2x128xf32, #tpu.memory_space<vmem>>, vector<2x128xf32>
    %cst_13 = arith.constant 5.000000e-01 : f32
    %12 = vector.broadcast %cst_13 : f32 to vector<2x128xf32>
    %13 = arith.mulf %10, %12 : vector<2x128xf32>
    %14 = math.exp %13 : vector<2x128xf32>
    %15 = arith.mulf %14, %11 : vector<2x128xf32>
    %16 = arith.addf %9, %15 : vector<2x128xf32>
    %c0_14 = arith.constant 0 : index
    %c0_15 = arith.constant 0 : index
    %17 = vector.load %arg8[%c0_14, %c0_15] : memref<2x128xf32, #tpu.memory_space<vmem>>, vector<2x128xf32>
    tpu.vector_store %arg8[%c0_14, %c0_15], %16 {strides = array<i32>} : memref<2x128xf32, #tpu.memory_space<vmem>>, vector<2x128xf32>,
    return
  }
  func.func @transform_0(%arg0: i32) -> (i32, i32) {
    %c0_i32 = arith.constant 0 : i32
    %c0_i32_0 = arith.constant 0 : i32
    return %arg0, %c0_i32 : i32, i32
  }
  func.func @transform_1(%arg0: i32) -> (i32, i32) {
    %c0_i32 = arith.constant 0 : i32
    %c0_i32_0 = arith.constant 0 : i32
    return %arg0, %c0_i32 : i32, i32
  }
  func.func @transform_2(%arg0: i32) -> (i32, i32) {
    %c0_i32 = arith.constant 0 : i32
    %c0_i32_0 = arith.constant 0 : i32
    return %arg0, %c0_i32 : i32, i32
  }
  func.func @transform_3(%arg0: i32) -> (i32, i32) {
    %c0_i32 = arith.constant 0 : i32
    %c0_i32_0 = arith.constant 0 : i32
    return %arg0, %c0_i32 : i32, i32
  }
  func.func @transform_4(%arg0: i32) -> (i32, i32) {
    %c0_i32 = arith.constant 0 : i32
    %c0_i32_0 = arith.constant 0 : i32
    return %arg0, %c0_i32 : i32, i32
  }
  func.func @transform_5(%arg0: i32) -> (i32, i32) {
    %c0_i32 = arith.constant 0 : i32
    %c0_i32_0 = arith.constant 0 : i32
    return %arg0, %c0_i32 : i32, i32
  }
  func.func @transform_6(%arg0: i32) -> (i32, i32) {
    %c0_i32 = arith.constant 0 : i32
    %c0_i32_0 = arith.constant 0 : i32
    return %arg0, %c0_i32 : i32, i32
  }
  func.func @transform_7(%arg0: i32) -> (i32, i32) {
    %c0_i32 = arith.constant 0 : i32
    %c0_i32_0 = arith.constant 0 : i32
    return %arg0, %c0_i32 : i32, i32
  }
}

</mosaic_0001>

<bundles_post_ra>
// kernel: tpu_custom_call.1
= control target key start
LH: loop header
LB: loop body
LE: loop exit
PB: predicated region body
PF: predicated region fallthrough
CT: control target
= control target key end

     0   :  { %13 = vsyncpa [#allocation3], 0  ;;  %s259_s0 = inlined_call_operand.hbm [shape: f32[2,128], index: 0, kind: input, shape index: {}]   ;;  %s260_s1 = inlined_call_operand.vmem [shape: f32[2,128], index: 1, kind: input, shape index: {}]   ;;  %s261_s2 = inlined_call_operand.vmem [shape: f32[2,128], index: 2, kind: input, shape index: {}]   ;;  %s262_s3 = inlined_call_operand.vmem [shape: f32[2,128], index: 3, kind: input, shape index: {}]   ;;  %s263_s4 = inlined_call_operand.vmem [shape: f32[2,128], index: 4, kind: input, shape index: {}]   ;;  %s264_s5 = inlined_call_operand.vmem [shape: f32[2,128], index: 5, kind: input, shape index: {}]   ;;  %s265_s6 = inlined_call_operand.hbm [shape: f32[2,128], index: 6, kind: output, shape index: {0}]   ;;  %s266_s7 = inlined_call_operand.hbm [shape: f32[2,128], index: 7, kind: output, shape index: {1}]  }
   0x1   :  { %14 = vsyncpa [#allocation4], 0 }
   0x2   :  { %15 = vsyncpa [#allocation7], 0  ;;  %s165_s24 = smov [#allocation2]   ;;  %s93_s28 = scalar_lea.hbm %s259_s0, 32 }
   0x3   :  { %s22_s25 = sshll.u32 %s165_s24, 4  ;;  %p94_p0 = scmp.ne.s32.totalorder %s259_s0, %s93_s28  ;;  %s23_s25 = int_to_ptr.vmem [resolvable:$true] %s22_s25 }
   0x4   :  { %p97_p1 = scmp.lt.u32.totalorder %s93_s28, %s259_s0 }
   0x6   :  { %p99_p2 = pnand %p97_p1, %p94_p0 }
   0x8   :  { %102 = shalt.err (!%p99_p2)
}
   0x9   :  { %s103_s10 = scalar_lea.vmem %s23_s25, 32  ;;  %p108_p4 = scmp.lt.s32.totalorder %s23_s25, %s23_s25 }
   0xa   :  { %p104_p3 = scmp.ne.s32.totalorder %s23_s25, %s103_s10  ;;  %p109_p5 = scmp.lt.s32.totalorder %s103_s10, %s103_s10 }
   0xc   :  { %p110_p6 = por %p109_p5, %p108_p4 }
   0xe   :  { %p111_p7 = pnand %p110_p6, %p104_p3 }
  0x10   :  { %114 = shalt.err (!%p111_p7)
}
  0x11   :  { %25 = dma.hbm_to_vmem [thread:$0]  %s259_s0, 32, %s23_s25, [#allocation3]  }
  0x12   :  { %159 = dma.done.wait [#allocation3], 32  }
  0x13   :  { %160 = vsyncadd [#allocation3], 4294967264  ;;  %v40_v0 = vld [vmem:[%s260_s1] sm:$0x3]  ;;  %s166_s1 = smov [#allocation5]   ;;  %s167_s22 = smov [#allocation6]  }
  0x14   :  { %v42_v1 = vmul.f32 0.5, %v40_v0  ;;  %v49_v2 = vld [vmem:[%s263_s4] sm:$0x3]  ;;  %s63_s20 = sshll.u32 %s166_s1, 4  ;;  %s73_s23 = sshll.u32 %s167_s22, 4  ;;  %s64_s20 = int_to_ptr.vmem [resolvable:$true] %s63_s20  ;;  %s74_s23 = int_to_ptr.vmem [resolvable:$true] %s73_s23 }
  0x15   :  { %v51_v3 = vmul.f32 0.5, %v49_v2  ;;  %v41_v6 = vld [vmem:[%s261_s2] sm:$0x3]  ;;  %s115_s2 = scalar_lea.vmem %s64_s20, 32  ;;  %p120_p9 = scmp.lt.s32.totalorder %s64_s20, %s64_s20 }
  0x16   :  { %v43_v4 = vmul.f32 1.442695, %v42_v1  ;;  %v50_v7 = vld [vmem:[%s264_s5] sm:$0x3]  ;;  %p116_p8 = scmp.ne.s32.totalorder %s64_s20, %s115_s2  ;;  %p121_p10 = scmp.lt.s32.totalorder %s115_s2, %s115_s2 }
  0x17   :  { %v52_v5 = vmul.f32 1.442695, %v51_v3  ;;  %v39_v9 = vld [vmem:[#allocation2] sm:$0x3] }
  0x18   :  { %89 = vpow2.f32 %v43_v4  ;;  %v48_v12 = vld [vmem:[%s262_s3] sm:$0x3]  ;;  %p122_p11 = por %p121_p10, %p120_p9 }
  0x19   :  { %91 = vpow2.f32 %v52_v5 }
  0x1a   :  { %p123_p12 = pnand %p122_p11, %p116_p8 }
  0x22   :  { %v90_v8 = vpop.eup %89 }
  0x23   :  { %v92_v10 = vpop.eup %91  ;;  %v45_v11 = vmul.f32 %v90_v8, %v41_v6 }
  0x24   :  { %v54_v13 = vmul.f32 %v92_v10, %v50_v7 }
  0x25   :  { %v46_v14 = vadd.f32 %v45_v11, %v39_v9 }
  0x26   :  { %v55_v15 = vadd.f32 %v54_v13, %v48_v12 }
  0x27   :  { %47 = vst [vmem:[#allocation5] sm:$0x3] %v46_v14 }
  0x28   :  { %56 = vst [vmem:[#allocation6] sm:$0x3] %v55_v15 }
  0x29   :  { %126 = shalt.err (!%p123_p12)
}
  0x2a   :  { %s127_s3 = scalar_lea.hbm %s265_s6, 32 }
  0x2b   :  { %p128_p13 = scmp.ne.s32.totalorder %s265_s6, %s127_s3  ;;  %p131_p0 = scmp.lt.u32.totalorder %s127_s3, %s265_s6 }
  0x2d   :  { %p133_p1 = pnand %p131_p0, %p128_p13 }
  0x2f   :  { %136 = shalt.err (!%p133_p1)
}
  0x30   :  { %66 = dma.vmem_to_hbm [thread:$0]  %s64_s20, 32, %s265_s6, [#allocation4]  }
  0x31   :  { %s137_s8 = scalar_lea.vmem %s74_s23, 32  ;;  %p142_p3 = scmp.lt.s32.totalorder %s74_s23, %s74_s23 }
  0x32   :  { %p138_p2 = scmp.ne.s32.totalorder %s74_s23, %s137_s8  ;;  %p143_p4 = scmp.lt.s32.totalorder %s137_s8, %s137_s8 }
  0x34   :  { %p144_p5 = por %p143_p4, %p142_p3 }
  0x36   :  { %p145_p6 = pnand %p144_p5, %p138_p2 }
  0x38   :  { %148 = shalt.err (!%p145_p6)
}
  0x39   :  { %s149_s11 = scalar_lea.hbm %s266_s7, 32 }
  0x3a   :  { %p150_p7 = scmp.ne.s32.totalorder %s266_s7, %s149_s11  ;;  %p153_p8 = scmp.lt.u32.totalorder %s149_s11, %s266_s7 }
  0x3c   :  { %p155_p9 = pnand %p153_p8, %p150_p7 }
  0x3e   :  { %158 = shalt.err (!%p155_p9)
}
  0x3f   :  { %76 = dma.vmem_to_hbm [thread:$0]  %s74_s23, 32, %s266_s7, [#allocation7]  }
  0x40   :  { %161 = dma.done.wait [#allocation4], 32  }
  0x41   :  { %162 = vsyncadd [#allocation4], 4294967264 }
  0x42   :  { %163 = dma.done.wait [#allocation7], 32  }
  0x43   :  { %164 = vsyncadd [#allocation7], 4294967264 }
  0x44   :  { %83 = vsyncpa [#allocation3], 1 }
  0x45   :  { %84 = vsyncpa [#allocation4], 1 }
  0x46   :  { %85 = vsyncpa [#allocation7], 1 }

</bundles_post_ra>
